<compile_context>
chip_gen: v7x
topology: tpu7x:2x2x1
jax: 0.10.0
libtpu: 0.0.40
codegen_flags: <defaults>
</compile_context>

<pallas_src>
import jax
import jax.numpy as jnp
from jax.experimental import pallas as pl
from jax.experimental.pallas import tpu as pltpu

EMB = 128          # out_features of fc_z_s / fc_z_t (fixed by the module)
NEG_SLOPE = 0.2    # LeakyReLU negative slope


# ---------------------------------------------------------------------------
# Fused Pallas kernel: folded heads + fc1, fc2, fc3 + sigmoid
# ---------------------------------------------------------------------------

def _disc_kernel(sig_ref, zs_ref, zt_ref, wfs_ref, wft_ref, bmix_ref, b1_ref,
                 w2_ref, b2_ref, w3_ref, o_ref):
    # SMEM scalars: per-layer 1/sigma (spectral norm) and the scalar fc3 bias.
    inv_s1s = sig_ref[0]   # 1 / (sigma_fc1 * sigma_fc_z_s)
    inv_s1t = sig_ref[1]   # 1 / (sigma_fc1 * sigma_fc_z_t)
    inv_s1  = sig_ref[2]   # 1 / sigma_fc1            (scales the folded bias term)
    inv_s2  = sig_ref[3]   # 1 / sigma_fc2
    inv_s3  = sig_ref[4]   # 1 / sigma_fc3
    b3      = sig_ref[5]   # fc3 bias

    dn = (((1,), (1,)), ((), ()))   # contract in_features of x with in_features of (out,in) weight
    bf16 = jnp.bfloat16

    def leaky(x):
        return jnp.where(x >= 0.0, x, NEG_SLOPE * x)

    # Heads folded into fc_blocks[0]:
    #   h = z_s @ (W1L Ws)^T/(s1*ss) + z_t @ (W1R Wt)^T/(s1*st) + (W1 cat(bs,bt))/s1 + b1
    h = jax.lax.dot_general(zs_ref[...].astype(bf16), wfs_ref[...], dn,
                            preferred_element_type=jnp.float32) * inv_s1s
    h = h + jax.lax.dot_general(zt_ref[...].astype(bf16), wft_ref[...], dn,
                                preferred_element_type=jnp.float32) * inv_s1t
    h = leaky(h + bmix_ref[...] * inv_s1 + b1_ref[...])                        # (TB, hidden)

    # fc_blocks[2] + LeakyReLU
    h = jax.lax.dot_general(h.astype(bf16), w2_ref[...], dn,
                            preferred_element_type=jnp.float32) * inv_s2 + b2_ref[...]
    h = leaky(h)                                                               # (TB, hidden)

    # fc_blocks[4] (hidden -> 1) as broadcast-mul + lane reduction (VPU + XLU), then sigmoid
    logit = jnp.sum(h * w3_ref[...], axis=1, keepdims=True) * inv_s3 + b3      # (TB, 1)
    # sigmoid: exp on EUP, approx reciprocal on EUP (no VALU divide)
    o_ref[...] = pl.reciprocal(1.0 + jnp.exp(-logit), approx=True).astype(o_ref.dtype)
    # TODO(synk): for very large batch tiles, a lane-dense (1, TB) logit layout would avoid
    # masked partial stores on the 1-wide output; negligible at these sizes.


def discriminator_pallas(z_s, z_t, sig, wfs, wft, bmix, b1, w2, b2, w3):
    B = z_s.shape[0]

    # Batch tiling: pad B to a multiple of 16 (bf16 sublane tile); grid=(1,) for small B,
    # TB=256 tiles (MXU-filling, "parallel" across v7x TensorCores) for large B.
    if B <= 256:
        B_pad = ((B + 15) // 16) * 16
        TB = B_pad
    else:
        B_pad = ((B + 255) // 256) * 256
        TB = 256                     # note: 128 is the better tile on v5e's 4x128x128 MXU
    if B_pad != B:
        pad = B_pad - B
        z_s = jnp.pad(z_s, ((0, pad), (0, 0)))
        z_t = jnp.pad(z_t, ((0, pad), (0, 0)))
    nb = B_pad // TB

    def resident(a):                  # fetched once, stays in VMEM across all batch tiles
        n = a.ndim
        return pl.BlockSpec(a.shape, lambda i, _n=n: (0,) * _n)

    in_specs = [
        pl.BlockSpec(memory_space=pltpu.MemorySpace.SMEM),      # 1/sigma scalars + b3
        pl.BlockSpec((TB, z_s.shape[1]), lambda i: (i, 0)),     # z_s batch tile
        pl.BlockSpec((TB, z_t.shape[1]), lambda i: (i, 0)),     # z_t batch tile
        resident(wfs), resident(wft), resident(bmix), resident(b1),
        resident(w2), resident(b2), resident(w3),
    ]
    out_spec = pl.BlockSpec((TB, 1), lambda i: (i, 0))

    flops = 2 * B_pad * (wfs.size + wft.size + w2.size + w3.size)
    bytes_accessed = (2 * (wfs.size + wft.size + w2.size)                       # bf16 weights
                      + 4 * (z_s.size + z_t.size + bmix.size + b1.size
                             + b2.size + w3.size + sig.size + B_pad))

    out = pl.pallas_call(
        _disc_kernel,
        out_shape=jax.ShapeDtypeStruct((B_pad, 1), jnp.float32),
        grid=(nb,),
        in_specs=in_specs,
        out_specs=out_spec,
        compiler_params=pltpu.CompilerParams(dimension_semantics=("parallel",)),
        cost_estimate=pl.CostEstimate(flops=int(flops),
                                      transcendentals=int(2 * B_pad),
                                      bytes_accessed=int(bytes_accessed)),
    )(sig, z_s, z_t, wfs, wft, bmix, b1, w2, b2, w3)
    return out[:B]


# ---------------------------------------------------------------------------
# Spectral-norm sigma (scalar only — no normalized-weight materialization)
# ---------------------------------------------------------------------------

def _l2_normalize(v, eps=1e-12):
    return v / jnp.maximum(jnp.linalg.norm(v), eps)


def spectral_sigma(w, u, n_power_iterations=1, eps=1e-12):
    """Scalar sigma estimated by power iteration from stored buffer u (PyTorch math)."""
    w_mat = w.reshape(w.shape[0], -1)
    v = None
    for _ in range(n_power_iterations):
        v = _l2_normalize(w_mat.T @ u, eps)
        u = _l2_normalize(w_mat @ v, eps)
    return u @ (w_mat @ v)


# ---------------------------------------------------------------------------
# One-time parameter preparation: head/fc1 fold (sigma-independent) + bf16 cast
# ---------------------------------------------------------------------------

def prepare_params(params):
    ws, wt, w1 = params['fc_z_s_w'], params['fc_z_t_w'], params['fc1_w']
    w1l, w1r = w1[:, :EMB], w1[:, EMB:]
    wfs = (w1l @ ws).astype(jnp.bfloat16)                     # (hidden, z_s_dim)
    wft = (w1r @ wt).astype(jnp.bfloat16)                     # (hidden, z_t_dim)
    bmix = (w1 @ jnp.concatenate([params['fc_z_s_b'], params['fc_z_t_b']]))
    return {
        # kernel inputs
        'wfs': wfs, 'wft': wft,
        'bmix': bmix.reshape(1, -1).astype(jnp.float32),
        'b1': params['fc1_b'].reshape(1, -1).astype(jnp.float32),
        'w2': params['fc2_w'].astype(jnp.bfloat16),
        'b2': params['fc2_b'].reshape(1, -1).astype(jnp.float32),
        'w3': params['fc3_w'].astype(jnp.float32),            # (1, hidden), tiny -> keep f32
        'b3_scalar': params['fc3_b'].reshape(())[...].astype(jnp.float32),
        # raw f32 weights + u buffers, only read by the scalar sigma mat-vecs
        'raw_ws': ws, 'raw_wt': wt, 'raw_w1': w1,
        'raw_w2': params['fc2_w'], 'raw_w3': params['fc3_w'],
        'u_s': params['fc_z_s_u'], 'u_t': params['fc_z_t_u'],
        'u_1': params['fc1_u'], 'u_2': params['fc2_u'], 'u_3': params['fc3_u'],
    }


# ---------------------------------------------------------------------------
# Forward wrapper (mode='orig' by default; pass perm_t for mode='perm')
# ---------------------------------------------------------------------------

def discriminator_forward(z_s, z_t, prepared, perm_t=None):
    if perm_t is not None:
        # mode='perm': PyTorch forward only consumes the permuted z_t (z_s stays original)
        z_t = jnp.take(z_t, perm_t, axis=0)

    p = prepared
    s_s = spectral_sigma(p['raw_ws'], p['u_s'])
    s_t = spectral_sigma(p['raw_wt'], p['u_t'])
    s_1 = spectral_sigma(p['raw_w1'], p['u_1'])
    s_2 = spectral_sigma(p['raw_w2'], p['u_2'])
    s_3 = spectral_sigma(p['raw_w3'], p['u_3'])

    sig = jnp.stack([1.0 / (s_1 * s_s), 1.0 / (s_1 * s_t), 1.0 / s_1,
                     1.0 / s_2, 1.0 / s_3, p['b3_scalar']]).astype(jnp.float32)

    return discriminator_pallas(z_s, z_t, sig,
                                p['wfs'], p['wft'], p['bmix'], p['b1'],
                                p['w2'], p['b2'], p['w3'])


# ---------------------------------------------------------------------------
# Pure-JAX f32 reference (mirrors the PyTorch module exactly, no fold / no bf16)
# ---------------------------------------------------------------------------

def _spectral_normalize_ref(w, u, eps=1e-12):
    w_mat = w.reshape(w.shape[0], -1)
    v = _l2_normalize(w_mat.T @ u, eps)
    u = _l2_normalize(w_mat @ v, eps)
    return w / (u @ (w_mat @ v))


def reference_forward(z_s, z_t, params):
    sn = _spectral_normalize_ref

    def lin(x, w, b):
        return x @ w.T + b

    def leaky(x):
        return jnp.where(x >= 0.0, x, NEG_SLOPE * x)

    e_s = lin(z_s, sn(params['fc_z_s_w'], params['fc_z_s_u']), params['fc_z_s_b'])
    e_t = lin(z_t, sn(params['fc_z_t_w'], params['fc_z_t_u']), params['fc_z_t_b'])
    h = jnp.concatenate([e_s, e_t], axis=1)
    h = leaky(lin(h, sn(params['fc1_w'], params['fc1_u']), params['fc1_b']))
    h = leaky(lin(h, sn(params['fc2_w'], params['fc2_u']), params['fc2_b']))
    logit = lin(h, sn(params['fc3_w'], params['fc3_u']), params['fc3_b'])
    return 1.0 / (1.0 + jnp.exp(-logit))


# ---------------------------------------------------------------------------
# Main
# ---------------------------------------------------------------------------

if __name__ == "__main__":
    key = jax.random.PRNGKey(0)
    B, z_s_dim, z_t_dim, hidden = 8, 32, 32, 256   # hidden_dim default of the module
    ks = jax.random.split(key, 20)

    def init(k, shape, scale):
        return scale * jax.random.normal(k, shape, jnp.float32)

    # deterministic synthetic parameters in PyTorch (out_features, in_features) layout,
    # plus the spectral-norm power-iteration buffers `u`
    params = {
        'fc_z_s_w': init(ks[0], (EMB, z_s_dim), 0.3),
        'fc_z_s_b': init(ks[1], (EMB,), 0.1),
        'fc_z_s_u': jax.random.normal(ks[2], (EMB,), jnp.float32),
        'fc_z_t_w': init(ks[3], (EMB, z_t_dim), 0.3),
        'fc_z_t_b': init(ks[4], (EMB,), 0.1),
        'fc_z_t_u': jax.random.normal(ks[5], (EMB,), jnp.float32),
        'fc1_w':    init(ks[6], (hidden, 2 * EMB), 0.1),
        'fc1_b':    init(ks[7], (hidden,), 0.1),
        'fc1_u':    jax.random.normal(ks[8], (hidden,), jnp.float32),
        'fc2_w':    init(ks[9], (hidden, hidden), 0.1),
        'fc2_b':    init(ks[10], (hidden,), 0.1),
        'fc2_u':    jax.random.normal(ks[11], (hidden,), jnp.float32),
        'fc3_w':    init(ks[12], (1, hidden), 0.1),
        'fc3_b':    init(ks[13], (1,), 0.1),
        'fc3_u':    jax.random.normal(ks[14], (1,), jnp.float32),
    }

    z_s = jax.random.normal(ks[15], (B, z_s_dim), jnp.float32)
    z_t = jax.random.normal(ks[16], (B, z_t_dim), jnp.float32)

    prepared = prepare_params(params)     # one-time fold + bf16 cast (sigma-independent)
    fwd = jax.jit(discriminator_forward)

    # mode='orig'
    out = jax.block_until_ready(fwd(z_s, z_t, prepared))
    ref = reference_forward(z_s, z_t, params)
    assert out.shape == (B, 1)
    assert jnp.allclose(out, ref, atol=2e-2, rtol=2e-2), "orig-mode mismatch vs reference"

    # mode='perm' (torch.randperm -> jax.random.permutation in the wrapper; only z_t permuted)
    perm = jax.random.permutation(ks[17], B)
    out_p = jax.block_until_ready(fwd(z_s, z_t, prepared, perm))
    ref_p = reference_forward(z_s, jnp.take(z_t, perm, axis=0), params)
    assert jnp.allclose(out_p, ref_p, atol=2e-2, rtol=2e-2), "perm-mode mismatch vs reference"

    print("KERNEL_OK")
</pallas_src>

<mosaic_0001>
module attributes {stable_mosaic.version = 11 : i64} {
  func.func @_disc_kernel(%arg0: i32, %arg1: memref<6xf32, #tpu.memory_space<smem>>, %arg2: memref<16x32xf32, #tpu.memory_space<vmem>>, %arg3: memref<16x32xf32, #tpu.memory_space<vmem>>, %arg4: memref<256x32xbf16, #tpu.memory_space<vmem>>, %arg5: memref<256x32xbf16, #tpu.memory_space<vmem>>, %arg6: memref<1x256xf32, #tpu.memory_space<vmem>>, %arg7: memref<1x256xf32, #tpu.memory_space<vmem>>, %arg8: memref<256x256xbf16, #tpu.memory_space<vmem>>, %arg9: memref<1x256xf32, #tpu.memory_space<vmem>>, %arg10: memref<1x256xf32, #tpu.memory_space<vmem>>, %arg11: memref<16x1xf32, #tpu.memory_space<vmem>>) attributes {dimension_semantics = [#tpu.dimension_semantics<parallel>], iteration_bounds = array<i64: 1>, scalar_prefetch = 0 : i64, scratch_operands = 0 : i64, tpu.core_type = #tpu.core_type<tc>, window_params = [{transform_indices = @transform_0, window_bounds = array<i64: 6>}, {transform_indices = @transform_1, window_bounds = array<i64: 16, 32>}, {transform_indices = @transform_2, window_bounds = array<i64: 16, 32>}, {pipeline_mode = #tpu.pipeline_mode<synchronous>, transform_indices = @transform_3, window_bounds = array<i64: 256, 32>}, {pipeline_mode = #tpu.pipeline_mode<synchronous>, transform_indices = @transform_4, window_bounds = array<i64: 256, 32>}, {pipeline_mode = #tpu.pipeline_mode<synchronous>, transform_indices = @transform_5, window_bounds = array<i64: 1, 256>}, {pipeline_mode = #tpu.pipeline_mode<synchronous>, transform_indices = @transform_6, window_bounds = array<i64: 1, 256>}, {pipeline_mode = #tpu.pipeline_mode<synchronous>, transform_indices = @transform_7, window_bounds = array<i64: 256, 256>}, {pipeline_mode = #tpu.pipeline_mode<synchronous>, transform_indices = @transform_8, window_bounds = array<i64: 1, 256>}, {pipeline_mode = #tpu.pipeline_mode<synchronous>, transform_indices = @transform_9, window_bounds = array<i64: 1, 256>}, {transform_indices = @transform_10, window_bounds = array<i64: 16, 1>}]} {
    %c0 = arith.constant 0 : index
    %0 = memref.load %arg1[%c0] : memref<6xf32, #tpu.memory_space<smem>>
    %c1 = arith.constant 1 : index
    %1 = memref.load %arg1[%c1] : memref<6xf32, #tpu.memory_space<smem>>
    %c2 = arith.constant 2 : index
    %2 = memref.load %arg1[%c2] : memref<6xf32, #tpu.memory_space<smem>>
    %c3 = arith.constant 3 : index
    %3 = memref.load %arg1[%c3] : memref<6xf32, #tpu.memory_space<smem>>
    %c4 = arith.constant 4 : index
    %4 = memref.load %arg1[%c4] : memref<6xf32, #tpu.memory_space<smem>>
    %c5 = arith.constant 5 : index
    %5 = memref.load %arg1[%c5] : memref<6xf32, #tpu.memory_space<smem>>
    %c0_0 = arith.constant 0 : index
    %c0_1 = arith.constant 0 : index
    %6 = vector.load %arg2[%c0_0, %c0_1] : memref<16x32xf32, #tpu.memory_space<vmem>>, vector<16x32xf32>
    %7 = arith.truncf %6 : vector<16x32xf32> to vector<16x32xbf16>
    %c0_2 = arith.constant 0 : index
    %c0_3 = arith.constant 0 : index
    %8 = vector.load %arg4[%c0_2, %c0_3] : memref<256x32xbf16, #tpu.memory_space<vmem>>, vector<256x32xbf16>
    %cst = arith.constant dense<0.000000e+00> : vector<16x256xf32>
    %9 = tpu.matmul %7, %8, %cst {dimension_numbers = #tpu.dot_dimension_numbers<[1], [1], [0], [0], [0, 0, 1, 0], [], []>} : vector<16x32xbf16>, vector<256x32xbf16>, vector<16x256xf32> -> vector<16x256xf32>
    %10 = vector.broadcast %0 : f32 to vector<16x256xf32>
    %11 = arith.mulf %9, %10 : vector<16x256xf32>
    %c0_4 = arith.constant 0 : index
    %c0_5 = arith.constant 0 : index
    %12 = vector.load %arg3[%c0_4, %c0_5] : memref<16x32xf32, #tpu.memory_space<vmem>>, vector<16x32xf32>
    %13 = arith.truncf %12 : vector<16x32xf32> to vector<16x32xbf16>
    %c0_6 = arith.constant 0 : index
    %c0_7 = arith.constant 0 : index
    %14 = vector.load %arg5[%c0_6, %c0_7] : memref<256x32xbf16, #tpu.memory_space<vmem>>, vector<256x32xbf16>
    %cst_8 = arith.constant dense<0.000000e+00> : vector<16x256xf32>
    %15 = tpu.matmul %13, %14, %cst_8 {dimension_numbers = #tpu.dot_dimension_numbers<[1], [1], [0], [0], [0, 0, 1, 0], [], []>} : vector<16x32xbf16>, vector<256x32xbf16>, vector<16x256xf32> -> vector<16x256xf32>
    %16 = vector.broadcast %1 : f32 to vector<16x256xf32>
    %17 = arith.mulf %15, %16 : vector<16x256xf32>
    %18 = arith.addf %11, %17 : vector<16x256xf32>
    %c0_9 = arith.constant 0 : index
    %c0_10 = arith.constant 0 : index
    %19 = vector.load %arg6[%c0_9, %c0_10] : memref<1x256xf32, #tpu.memory_space<vmem>>, vector<1x256xf32>
    %20 = vector.broadcast %2 : f32 to vector<1x256xf32>
    %21 = arith.mulf %19, %20 : vector<1x256xf32>
    %22 = vector.broadcast %21 : vector<1x256xf32> to vector<16x256xf32>
    %23 = arith.addf %18, %22 : vector<16x256xf32>
    %c0_11 = arith.constant 0 : index
    %c0_12 = arith.constant 0 : index
    %24 = vector.load %arg7[%c0_11, %c0_12] : memref<1x256xf32, #tpu.memory_space<vmem>>, vector<1x256xf32>
    %25 = vector.broadcast %24 : vector<1x256xf32> to vector<16x256xf32>
    %26 = arith.addf %23, %25 : vector<16x256xf32>
    %cst_13 = arith.constant 0.000000e+00 : f32
    %27 = vector.broadcast %cst_13 : f32 to vector<16x256xf32>
    %28 = arith.cmpf oge, %26, %27 : vector<16x256xf32>
    %cst_14 = arith.constant 2.000000e-01 : f32
    %29 = vector.broadcast %cst_14 : f32 to vector<16x256xf32>
    %30 = arith.mulf %29, %26 : vector<16x256xf32>
    %31 = arith.select %28, %26, %30 : vector<16x256xi1>, vector<16x256xf32>
    %32 = arith.truncf %31 : vector<16x256xf32> to vector<16x256xbf16>
    %c0_15 = arith.constant 0 : index
    %c0_16 = arith.constant 0 : index
    %33 = vector.load %arg8[%c0_15, %c0_16] : memref<256x256xbf16, #tpu.memory_space<vmem>>, vector<256x256xbf16>
    %cst_17 = arith.constant dense<0.000000e+00> : vector<16x256xf32>
    %34 = tpu.matmul %32, %33, %cst_17 {dimension_numbers = #tpu.dot_dimension_numbers<[1], [1], [0], [0], [0, 0, 1, 0], [], []>} : vector<16x256xbf16>, vector<256x256xbf16>, vector<16x256xf32> -> vector<16x256xf32>
    %35 = vector.broadcast %3 : f32 to vector<16x256xf32>
    %36 = arith.mulf %34, %35 : vector<16x256xf32>
    %c0_18 = arith.constant 0 : index
    %c0_19 = arith.constant 0 : index
    %37 = vector.load %arg9[%c0_18, %c0_19] : memref<1x256xf32, #tpu.memory_space<vmem>>, vector<1x256xf32>
    %38 = vector.broadcast %37 : vector<1x256xf32> to vector<16x256xf32>
    %39 = arith.addf %36, %38 : vector<16x256xf32>
    %cst_20 = arith.constant 0.000000e+00 : f32
    %40 = vector.broadcast %cst_20 : f32 to vector<16x256xf32>
    %41 = arith.cmpf oge, %39, %40 : vector<16x256xf32>
    %cst_21 = arith.constant 2.000000e-01 : f32
    %42 = vector.broadcast %cst_21 : f32 to vector<16x256xf32>
    %43 = arith.mulf %42, %39 : vector<16x256xf32>
    %44 = arith.select %41, %39, %43 : vector<16x256xi1>, vector<16x256xf32>
    %c0_22 = arith.constant 0 : index
    %c0_23 = arith.constant 0 : index
    %45 = vector.load %arg10[%c0_22, %c0_23] : memref<1x256xf32, #tpu.memory_space<vmem>>, vector<1x256xf32>
    %46 = vector.broadcast %45 : vector<1x256xf32> to vector<16x256xf32>
    %47 = arith.mulf %44, %46 : vector<16x256xf32>
    %cst_24 = arith.constant dense<0.000000e+00> : vector<16xf32>
    %48 = vector.multi_reduction <add>, %47, %cst_24 [1] : vector<16x256xf32> to vector<16xf32>
    %49 = vector.shape_cast %48 : vector<16xf32> to vector<16x1xf32>
    %50 = vector.broadcast %4 : f32 to vector<16x1xf32>
    %51 = arith.mulf %49, %50 : vector<16x1xf32>
    %52 = vector.broadcast %5 : f32 to vector<16x1xf32>
    %53 = arith.addf %51, %52 : vector<16x1xf32>
    %cst_25 = arith.constant 0.000000e+00 : f32
    %54 = vector.broadcast %cst_25 : f32 to vector<16x1xf32>
    %55 = arith.subf %54, %53 : vector<16x1xf32>
    %56 = math.exp %55 : vector<16x1xf32>
    %cst_26 = arith.constant 1.000000e+00 : f32
    %57 = vector.broadcast %cst_26 : f32 to vector<16x1xf32>
    %58 = arith.addf %57, %56 : vector<16x1xf32>
    %59 = tpu.reciprocal %58 {approx = true} : vector<16x1xf32> -> vector<16x1xf32>
    %c0_27 = arith.constant 0 : index
    %c0_28 = arith.constant 0 : index
    %60 = vector.load %arg11[%c0_27, %c0_28] : memref<16x1xf32, #tpu.memory_space<vmem>>, vector<16x1xf32>
    tpu.vector_store %arg11[%c0_27, %c0_28], %59 {strides = array<i32>} : memref<16x1xf32, #tpu.memory_space<vmem>>, vector<16x1xf32>,
    return
  }
  func.func @transform_0(%arg0: i32) -> i32 {
    %c0_i32 = arith.constant 0 : i32
    %c0_i32_0 = arith.constant 0 : i32
    return %c0_i32 : i32
  }
  func.func @transform_1(%arg0: i32) -> (i32, i32) {
    %c0_i32 = arith.constant 0 : i32
    %c0_i32_0 = arith.constant 0 : i32
    return %arg0, %c0_i32 : i32, i32
  }
  func.func @transform_2(%arg0: i32) -> (i32, i32) {
    %c0_i32 = arith.constant 0 : i32
    %c0_i32_0 = arith.constant 0 : i32
    return %arg0, %c0_i32 : i32, i32
  }
  func.func @transform_3(%arg0: i32) -> (i32, i32) {
    %c0_i32 = arith.constant 0 : i32
    %c0_i32_0 = arith.constant 0 : i32
    %c0_i32_1 = arith.constant 0 : i32
    return %c0_i32, %c0_i32_0 : i32, i32
  }
  func.func @transform_4(%arg0: i32) -> (i32, i32) {
    %c0_i32 = arith.constant 0 : i32
    %c0_i32_0 = arith.constant 0 : i32
    %c0_i32_1 = arith.constant 0 : i32
    return %c0_i32, %c0_i32_0 : i32, i32
  }
  func.func @transform_5(%arg0: i32) -> (i32, i32) {
    %c0_i32 = arith.constant 0 : i32
    %c0_i32_0 = arith.constant 0 : i32
    %c0_i32_1 = arith.constant 0 : i32
    return %c0_i32, %c0_i32_0 : i32, i32
  }
  func.func @transform_6(%arg0: i32) -> (i32, i32) {
    %c0_i32 = arith.constant 0 : i32
    %c0_i32_0 = arith.constant 0 : i32
    %c0_i32_1 = arith.constant 0 : i32
    return %c0_i32, %c0_i32_0 : i32, i32
  }
  func.func @transform_7(%arg0: i32) -> (i32, i32) {
    %c0_i32 = arith.constant 0 : i32
    %c0_i32_0 = arith.constant 0 : i32
    %c0_i32_1 = arith.constant 0 : i32
    return %c0_i32, %c0_i32_0 : i32, i32
  }
  func.func @transform_8(%arg0: i32) -> (i32, i32) {
    %c0_i32 = arith.constant 0 : i32
    %c0_i32_0 = arith.constant 0 : i32
    %c0_i32_1 = arith.constant 0 : i32
    return %c0_i32, %c0_i32_0 : i32, i32
  }
  func.func @transform_9(%arg0: i32) -> (i32, i32) {
    %c0_i32 = arith.constant 0 : i32
    %c0_i32_0 = arith.constant 0 : i32
    %c0_i32_1 = arith.constant 0 : i32
    return %c0_i32, %c0_i32_0 : i32, i32
  }
  func.func @transform_10(%arg0: i32) -> (i32, i32) {
    %c0_i32 = arith.constant 0 : i32
    %c0_i32_0 = arith.constant 0 : i32
    return %arg0, %c0_i32 : i32, i32
  }
}

</mosaic_0001>

<bundles_post_ra>
// kernel: discriminator_forward.1
= control target key start
LH: loop header
LB: loop body
LE: loop exit
PB: predicated region body
PF: predicated region fallthrough
CT: control target
= control target key end

     0   :  { %15 = vsyncpa [#allocation3], 0  ;;  %s1405_s0 = inlined_call_operand.vmem [shape: f32[6], index: 0, kind: input, shape index: {}]   ;;  %s1406_s1 = inlined_call_operand.vmem [shape: f32[16,32], index: 1, kind: input, shape index: {}]   ;;  %s1407_s2 = inlined_call_operand.vmem [shape: f32[16,32], index: 2, kind: input, shape index: {}]   ;;  %s1408_s3 = inlined_call_operand.vmem [shape: bf16[256,32], index: 3, kind: input, shape index: {}]   ;;  %s1409_s4 = inlined_call_operand.vmem [shape: bf16[256,32], index: 4, kind: input, shape index: {}]   ;;  %s1410_s5 = inlined_call_operand.vmem [shape: f32[1,256], index: 5, kind: input, shape index: {}]   ;;  %s1411_s6 = inlined_call_operand.vmem [shape: f32[1,256], index: 6, kind: input, shape index: {}]   ;;  %s1412_s7 = inlined_call_operand.vmem [shape: bf16[256,256], index: 7, kind: input, shape index: {}]   ;;  %s1413_s8 = inlined_call_operand.vmem [shape: f32[1,256], index: 8, kind: input, shape index: {}]   ;;  %s1414_s9 = inlined_call_operand.vmem [shape: f32[1,256], index: 9, kind: input, shape index: {}]   ;;  %s1415_s10 = inlined_call_operand.vmem [shape: f32[16,1], index: 10, kind: output, shape index: {}]  }
   0x1   :  { %s22_s15 = sshll.u32 %s1405_s0, 4  ;;  %s23_s15 = int_to_ptr.vmem [resolvable:$true] %s22_s15 }
   0x2   :  { %s1062_s16 = scalar_lea.vmem %s23_s15, 16  ;;  %p1067_p1 = scmp.lt.s32.totalorder %s23_s15, %s23_s15 }
   0x3   :  { %p1063_p0 = scmp.ne.s32.totalorder %s23_s15, %s1062_s16  ;;  %p1068_p2 = scmp.lt.s32.totalorder %s1062_s16, %s1062_s16 }
   0x5   :  { %p1069_p3 = por %p1068_p2, %p1067_p1 }
   0x7   :  { %p1070_p4 = pnand %p1069_p3, %p1063_p0 }
   0x9   :  { %1073 = shalt.err (!%p1070_p4)
}
   0xa   :  { %s1076_s17 = smov [#allocation2]  }
   0xb   :  { %25 = dma.vmem_to_smem %s23_s15, 16, %s1076_s17, [#allocation3]  }
   0xc   :  { %1074 = dma.done.wait [#allocation3], 16  }
   0xd   :  { %1075 = vsyncadd [#allocation3], 4294967280 }
   0xe   :  { %47 = sfence }
   0xf   :  { %v974_v0 = vld [vmem:[%s1408_s3 + $0x40] sm:$0xff]   ;;  %vm170_vm0 = vcmask 261120   ;;  %v976_v2 = vld [vmem:[%s1408_s3 + $0x48] sm:$0xff]   ;;  %v978_v6 = vld [vmem:[%s1408_s3 + $0x50] sm:$0xff]   ;;  %s851_s14 = sld [smem:[#allocation2 + $0x2]]  ;;  %s49_s15 = sld [smem:[#allocation2]] }
  0x10   :  { %v975_v1 = vld [vmem:[%s1408_s3] sm:$0xff]   ;;  %957 = vmatprep.subr.msk.bf16.mxu1 %vm170_vm0, %v974_v0  ;;  %v977_v4 = vld [vmem:[%s1408_s3 + $0x8] sm:$0xff]   ;;  %v979_v7 = vld [vmem:[%s1408_s3 + $0x10] sm:$0xff]   ;;  %s850_s16 = sld [smem:[#allocation2 + $0x1]]  ;;  %vm842_vm9 = vcmask 7168  }
  0x11   :  { %v175_v3 = vsel %vm170_vm0, %v975_v1, 0  ;;  %v178_v5 = vsel %vm170_vm0, %v977_v4, 0  ;;  %v55_v8 = vld [vmem:[%s1406_s1] sm:$0xff]  ;;  %v56_v9 = vld [vmem:[%s1406_s1 + $0x8] sm:$0xff]  ;;  %v181_v10 = vsel %vm170_vm0, %v979_v7, 0  ;;  %v980_v11 = vld [vmem:[%s1408_s3 + $0x58] sm:$0xff]  }
  0x12   :  { %922 = vmatpush3.bf16.xpose.msra.mxu1 %v175_v3  ;;  %v57_v12 = vpack.c.bf16 %v56_v9, %v55_v8  ;;  %v981_v13 = vld [vmem:[%s1408_s3 + $0x18] sm:$0xff]   ;;  %v982_v15 = vld [vmem:[%s1408_s3 + $0x60] sm:$0xff]   ;;  %v984_v18 = vld [vmem:[%s1408_s3 + $0x68] sm:$0xff]  }
  0x13   :  { %958 = vmatprep.subr.msk.bf16.mxu1 %vm170_vm0, %v976_v2  ;;  %v184_v14 = vsel %vm170_vm0, %v981_v13, 0  ;;  %v983_v16 = vld [vmem:[%s1408_s3 + $0x20] sm:$0xff]   ;;  %v1009_v21 = vld [vmem:[%s1412_s7 + $0x14] ss:$8 sps:$4 sm:$0xff]   ;;  %v985_v22 = vld [vmem:[%s1408_s3 + $0x28] sm:$0xff]  }
  0x14   :  { %937 = vmatprep.mubr.msk.bf16.mxu1 %vm170_vm0, %v57_v12  ;;  %v187_v17 = vsel %vm170_vm0, %v983_v16, 0  ;;  %v1006_v19 = vld [vmem:[%s1412_s7 + $0x4] ss:$8 sps:$4 sm:$0xff]   ;;  %v1008_v20 = vld [vmem:[%s1412_s7] ss:$8 sps:$4 sm:$0xff]   ;;  %v986_v23 = vld [vmem:[%s1408_s3 + $0x70] sm:$0xff]  }
  0x15   :  { %728 = vmatprep.subr.bf16.mxu0 %v1006_v19  ;;  %v1011_v24 = vld [vmem:[%s1412_s7 + $0x10] ss:$8 sps:$4 sm:$0xff]   ;;  %v190_v25 = vsel %vm170_vm0, %v985_v22, 0  ;;  %v1012_v26 = vld [vmem:[%s1412_s7 + $0x24] ss:$8 sps:$4 sm:$0xff]  }
  0x16   :  { %729 = vmatpush1.bf16.xpose.msra.mxu0 %v1008_v20  ;;  %v987_v27 = vld [vmem:[%s1408_s3 + $0x30] sm:$0xff]   ;;  %v988_v29 = vld [vmem:[%s1408_s3 + $0x78] sm:$0xff]   ;;  %v1014_v30 = vld [vmem:[%s1412_s7 + $0x20] ss:$8 sps:$4 sm:$0xff]  }
  0x17   :  { %730 = vmatprep.subr.bf16.mxu0 %v1009_v21  ;;  %v193_v28 = vsel %vm170_vm0, %v987_v27, 0  ;;  %v1015_v31 = vld [vmem:[%s1412_s7 + $0x34] ss:$8 sps:$4 sm:$0xff]   ;;  %v990_v34 = vld [vmem:[%s1409_s4 + $0x40] sm:$0xff]   ;;  %v1017_v35 = vld [vmem:[%s1412_s7 + $0x30] ss:$8 sps:$4 sm:$0xff]  }
  0x18   :  { %v989_v32 = vld [vmem:[%s1408_s3 + $0x38] sm:$0xff]   ;;  %v1018_v36 = vld [vmem:[%s1412_s7 + $0x44] ss:$8 sps:$4 sm:$0xff]   ;;  %v1020_v43 = vld [vmem:[%s1412_s7 + $0x40] ss:$8 sps:$4 sm:$0xff]  }
  0x19   :  { %v196_v33 = vsel %vm170_vm0, %v989_v32, 0  ;;  %v991_v37 = vld [vmem:[%s1409_s4] sm:$0xff]   ;;  %v271_v39 = vld [vmem:[%s1407_s2 + $0x8] sm:$0xff]  ;;  %v1021_v44 = vld [vmem:[%s1412_s7 + $0x54] ss:$8 sps:$4 sm:$0xff]   ;;  %v265_v32 = vstv %s49_s15 }
  0x1a   :  { %924 = vmatpush3.bf16.xpose.msra.mxu1 %v178_v5  ;;  %v270_v38 = vld [vmem:[%s1407_s2] sm:$0xff]  ;;  %v389_v41 = vsel %vm170_vm0, %v991_v37, 0  ;;  %v992_v42 = vld [vmem:[%s1409_s4 + $0x48] sm:$0xff]   ;;  %v994_v47 = vld [vmem:[%s1409_s4 + $0x50] sm:$0xff]  }
  0x1b   :  { %959 = vmatprep.subr.msk.bf16.mxu1 %vm170_vm0, %v978_v6  ;;  %v272_v40 = vpack.c.bf16 %v271_v39, %v270_v38  ;;  %v993_v45 = vld [vmem:[%s1409_s4 + $0x8] sm:$0xff]   ;;  %v1023_v48 = vld [vmem:[%s1412_s7 + $0x50] ss:$8 sps:$4 sm:$0xff]   ;;  %v998_v54 = vld [vmem:[%s1409_s4 + $0x60] sm:$0xff]  }
  0x1c   :  { %v392_v46 = vsel %vm170_vm0, %v993_v45, 0  ;;  %v995_v49 = vld [vmem:[%s1409_s4 + $0x10] sm:$0xff]   ;;  %v996_v51 = vld [vmem:[%s1409_s4 + $0x58] sm:$0xff]   ;;  %v999_v55 = vld [vmem:[%s1409_s4 + $0x20] sm:$0xff]  }
  0x1d   :  { %v395_v50 = vsel %vm170_vm0, %v995_v49, 0  ;;  %v997_v52 = vld [vmem:[%s1409_s4 + $0x18] sm:$0xff]   ;;  %v401_v56 = vsel %vm170_vm0, %v999_v55, 0  ;;  %v1000_v57 = vld [vmem:[%s1409_s4 + $0x68] sm:$0xff]   ;;  %v1002_v60 = vld [vmem:[%s1409_s4 + $0x70] sm:$0xff]  }
  0x1e   :  { %731 = vmatpush1.bf16.xpose.msra.mxu0 %v1011_v24  ;;  %v398_v53 = vsel %vm170_vm0, %v997_v52, 0  ;;  %v1001_v58 = vld [vmem:[%s1409_s4 + $0x28] sm:$0xff]   ;;  %v1003_v61 = vld [vmem:[%s1409_s4 + $0x30] sm:$0xff]   ;;  %v1004_v63 = vld [vmem:[%s1409_s4 + $0x78] sm:$0xff]  }
  0x1f   :  { %732 = vmatprep.subr.bf16.mxu0 %v1012_v26  ;;  %v404_v59 = vsel %vm170_vm0, %v1001_v58, 0  ;;  %v407_v62 = vsel %vm170_vm0, %v1003_v61, 0  ;;  %v1005_v0 = vld [vmem:[%s1409_s4 + $0x38] sm:$0xff]   ;;  %v1024_v2 = vld [vmem:[%s1412_s7 + $0x64] ss:$8 sps:$4 sm:$0xff]   ;;  %v492_v26 = vlaneseq }
  0x20   :  { %v410_v1 = vsel %vm170_vm0, %v1005_v0, 0  ;;  %v1026_v3 = vld [vmem:[%s1412_s7 + $0x60] ss:$8 sps:$4 sm:$0xff]   ;;  %v1027_v4 = vld [vmem:[%s1412_s7 + $0x74] ss:$8 sps:$4 sm:$0xff]  }
  0x21   :  { %v1029_v5 = vld [vmem:[%s1412_s7 + $0x70] ss:$8 sps:$4 sm:$0xff]   ;;  %v1030_v6 = vld [vmem:[%s1412_s7 + $0x84] ss:$8 sps:$4 sm:$0xff]   ;;  %v1032_v7 = vld [vmem:[%s1412_s7 + $0x80] ss:$8 sps:$4 sm:$0xff]  }
  0x22   :  { %926 = vmatpush3.bf16.xpose.msra.mxu1 %v181_v10  ;;  %v1033_v8 = vld [vmem:[%s1412_s7 + $0x94] ss:$8 sps:$4 sm:$0xff]   ;;  %v1035_v9 = vld [vmem:[%s1412_s7 + $0x90] ss:$8 sps:$4 sm:$0xff]   ;;  %v1036_v10 = vld [vmem:[%s1412_s7 + $0xa4] ss:$8 sps:$4 sm:$0xff]  }
  0x23   :  { %960 = vmatprep.subr.msk.bf16.mxu1 %vm170_vm0, %v980_v11  ;;  %v1038_v11 = vld [vmem:[%s1412_s7 + $0xa0] ss:$8 sps:$4 sm:$0xff]   ;;  %v1041_v13 = vld [vmem:[%s1412_s7 + $0xb0] ss:$8 sps:$4 sm:$0xff]   ;;  %v1045_v16 = vld [vmem:[%s1412_s7 + $0xd4] ss:$8 sps:$4 sm:$0xff]  }
  0x24   :  { %v1050_v19 = vld [vmem:[%s1412_s7 + $0xe0] ss:$8 sps:$4 sm:$0xff]   ;;  %v1051_v20 = vld [vmem:[%s1412_s7 + $0xf4] ss:$8 sps:$4 sm:$0xff]   ;;  %v1053_v21 = vld [vmem:[%s1412_s7 + $0xf0] ss:$8 sps:$4 sm:$0xff]  }
  0x25   :  { %v493_v27 = vshrl.u32 %v492_v26, 7 }
  0x26   :  { %733 = vmatpush1.bf16.xpose.msra.mxu0 %v1014_v30 }
  0x27   :  { %734 = vmatprep.subr.bf16.mxu0 %v1015_v31  ;;  %v1378_v31 = vsub.s32 0, %v493_v27 }
  0x2a   :  { %928 = vmatpush3.bf16.xpose.msra.mxu1 %v184_v14  ;;  %v1042_v14 = vld [vmem:[%s1412_s7 + $0xc4] ss:$8 sps:$4 sm:$0xff]  }
  0x2b   :  { %961 = vmatprep.subr.msk.bf16.mxu1 %vm170_vm0, %v982_v15  ;;  %v1044_v15 = vld [vmem:[%s1412_s7 + $0xc0] ss:$8 sps:$4 sm:$0xff]  }
  0x2e   :  { %735 = vmatpush1.bf16.xpose.msra.mxu0 %v1017_v35 }
  0x2f   :  { %736 = vmatprep.subr.bf16.mxu0 %v1018_v36  ;;  %v506_v36 = vld [vmem:[%s1411_s6] sm:$0x3] }
  0x32   :  { %930 = vmatpush3.bf16.xpose.msra.mxu1 %v187_v17  ;;  %v1047_v17 = vld [vmem:[%s1412_s7 + $0xd0] ss:$8 sps:$4 sm:$0xff]  }
  0x33   :  { %962 = vmatprep.subr.msk.bf16.mxu1 %vm170_vm0, %v984_v18  ;;  %v1048_v18 = vld [vmem:[%s1412_s7 + $0xe4] ss:$8 sps:$4 sm:$0xff]  }
  0x36   :  { %737 = vmatpush1.bf16.xpose.msra.mxu0 %v1020_v43 }
  0x37   :  { %738 = vmatprep.subr.bf16.mxu0 %v1021_v44 }
  0x3a   :  { %932 = vmatpush3.bf16.xpose.msra.mxu1 %v190_v25 }
  0x3b   :  { %963 = vmatprep.subr.msk.bf16.mxu1 %vm170_vm0, %v986_v23 }
  0x3e   :  { %739 = vmatpush1.bf16.xpose.msra.mxu0 %v1023_v48 }
  0x3f   :  { %740 = vmatprep.subr.bf16.mxu0 %v1024_v2 }
  0x42   :  { %934 = vmatpush3.bf16.xpose.msra.mxu1 %v193_v28  ;;  %v488_v28 = vld [vmem:[%s1410_s5] sm:$0x3]  ;;  %s852_s5 = sld [smem:[#allocation2 + $0x3]] }
  0x43   :  { %964 = vmatprep.subr.msk.bf16.mxu1 %vm170_vm0, %v988_v29  ;;  %v489_v29 = vstv %s851_s14 }
  0x44   :  { %v490_v30 = vmul.f32 %v489_v29, %v488_v28 }
  0x46   :  { %741 = vmatpush1.bf16.xpose.msra.mxu0 %v1026_v3  ;;  %v495_v39 = vrot.slane %v490_v30, %v1378_v31 }
  0x47   :  { %742 = vmatprep.subr.bf16.mxu0 %v1027_v4 }
  0x4a   :  { %936 = vmatpush3.bf16.xpose.msra.mxu1 %v196_v33  ;;  %v479_v33 = vstv %s850_s16 }
  0x4b   :  { %965 = vmatprep.subr.msk.bf16.mxu1 %vm170_vm0, %v990_v34  ;;  %v1380_v34 = vsub.s32 1, %v493_v27 }
  0x4d   :  { %v499_v43 = vrot.slane %v490_v30, %v1380_v34 }
  0x4e   :  { %743 = vmatpush1.bf16.xpose.msra.mxu0 %v1029_v5 }
  0x4f   :  { %744 = vmatprep.subr.bf16.mxu0 %v1030_v6 }
  0x51   :  { %938 = vmatmul.mubr.msk.bf16.vlgmr.msra.gmra.mrb[0].mxu1 %vm170_vm0, %v57_v12  ;;  %v1039_v12 = vld [vmem:[%s1412_s7 + $0xb4] ss:$8 sps:$4 sm:$0xff]  }
  0x52   :  { %940 = vmatpush3.bf16.xpose.msra.mxu1 %v389_v41  ;;  %955 = vmatprep.mubr.msk.bf16.mxu1 %vm170_vm0, %v272_v40 }
  0x53   :  { %966 = vmatprep.subr.msk.bf16.mxu1 %vm170_vm0, %v992_v42 }
  0x56   :  { %745 = vmatpush1.bf16.xpose.msra.mxu0 %v1032_v7 }
  0x57   :  { %746 = vmatprep.subr.bf16.mxu0 %v1033_v8 }
  0x5a   :  { %942 = vmatpush3.bf16.xpose.msra.mxu1 %v392_v46 }
  0x5b   :  { %967 = vmatprep.subr.msk.bf16.mxu1 %vm170_vm0, %v994_v47  ;;  %v511_v47 = vrot.slane %v506_v36, %v1378_v31 }
  0x5e   :  { %747 = vmatpush1.bf16.xpose.msra.mxu0 %v1035_v9 }
  0x5f   :  { %748 = vmatprep.subr.bf16.mxu0 %v1036_v10  ;;  %v776_v10 = vld [vmem:[%s1413_s8] sm:$0x3]  ;;  %s853_s8 = sld [smem:[#allocation2 + $0x4]] }
  0x62   :  { %944 = vmatpush3.bf16.xpose.msra.mxu1 %v395_v50 }
  0x63   :  { %968 = vmatprep.subr.msk.bf16.mxu1 %vm170_vm0, %v996_v51 }
  0x66   :  { %749 = vmatpush1.bf16.xpose.msra.mxu0 %v1038_v11  ;;  %v771_v11 = vstv %s852_s5 }
  0x67   :  { %750 = vmatprep.subr.bf16.mxu0 %v1039_v12  ;;  %v781_v12 = vrot.slane %v776_v10, %v1378_v31 }
  0x6a   :  { %946 = vmatpush3.bf16.xpose.msra.mxu1 %v398_v53  ;;  %v515_v53 = vrot.slane %v506_v36, %v1380_v34 }
  0x6b   :  { %969 = vmatprep.subr.msk.bf16.mxu1 %vm170_vm0, %v998_v54 }
  0x6e   :  { %751 = vmatpush1.bf16.xpose.msra.mxu0 %v1041_v13 }
  0x6f   :  { %752 = vmatprep.subr.bf16.mxu0 %v1042_v14  ;;  %v785_v14 = vrot.slane %v776_v10, %v1380_v34 }
  0x72   :  { %948 = vmatpush3.bf16.xpose.msra.mxu1 %v401_v56 }
  0x73   :  { %970 = vmatprep.subr.msk.bf16.mxu1 %vm170_vm0, %v1000_v57 }
  0x76   :  { %753 = vmatpush1.bf16.xpose.msra.mxu0 %v1044_v15 }
  0x77   :  { %754 = vmatprep.subr.bf16.mxu0 %v1045_v16 }
  0x7a   :  { %950 = vmatpush3.bf16.xpose.msra.mxu1 %v404_v59 }
  0x7b   :  { %971 = vmatprep.subr.msk.bf16.mxu1 %vm170_vm0, %v1002_v60 }
  0x7e   :  { %755 = vmatpush1.bf16.xpose.msra.mxu0 %v1047_v17  ;;  %v804_v17 = vld [vmem:[%s1414_s9] sm:$0x3]  ;;  %s854_s9 = sld [smem:[#allocation2 + $0x5]] }
  0x7f   :  { %756 = vmatprep.subr.bf16.mxu0 %v1048_v18  ;;  %v813_v28 = vrot.slane %v804_v17, %v1380_v34  ;;  %v826_v34 = vstv %s853_s8 }
  0x82   :  { %952 = vmatpush3.bf16.xpose.msra.mxu1 %v407_v62 }
  0x83   :  { %972 = vmatprep.subr.msk.bf16.mxu1 %vm170_vm0, %v1004_v63 }
  0x86   :  { %757 = vmatpush1.bf16.xpose.msra.mxu0 %v1050_v19 }
  0x87   :  { %758 = vmatprep.subr.bf16.mxu0 %v1051_v20 }
  0x8a   :  { %954 = vmatpush3.bf16.xpose.msra.mxu1 %v410_v1 }
  0x8e   :  { %759 = vmatpush1.bf16.xpose.msra.mxu0 %v1053_v21 }
  0x91   :  { %956 = vmatmul.mubr.msk.bf16.vlgmr.msra.gmra.mrb[4].mxu1 %vm170_vm0, %v272_v40 }
 0x124   :  { %v256_v22 = vpop.f32.mrb[0].mxu1 }
 0x125   :  { %v258_v23 = vpop.f32.mrb[1].mxu1  ;;  %v266_v37 = vmul.f32 %v265_v32, %v256_v22 }
 0x126   :  { %v260_v24 = vpop.f32.mrb[2].mxu1  ;;  %v267_v41 = vmul.f32 %v265_v32, %v258_v23 }
 0x127   :  { %v262_v25 = vpop.f32.mrb[3].mxu1  ;;  %v268_v45 = vmul.f32 %v265_v32, %v260_v24 }
 0x128   :  { %v269_v50 = vmul.f32 %v265_v32, %v262_v25  ;;  %v809_v25 = vrot.slane %v804_v17, %v1378_v31 }
 0x164   :  { %v470_v35 = vpop.f32.mrb[4].mxu1 }
 0x165   :  { %v480_v38 = vmul.f32 %v479_v33, %v470_v35  ;;  %v472_v40 = vpop.f32.mrb[5].mxu1 }
 0x166   :  { %v481_v42 = vmul.f32 %v479_v33, %v472_v40  ;;  %v474_v44 = vpop.f32.mrb[6].mxu1 }
 0x167   :  { %v484_v46 = vadd.f32 %v480_v38, %v266_v37  ;;  %v482_v48 = vmul.f32 %v479_v33, %v474_v44  ;;  %v476_v49 = vpop.f32.mrb[7].mxu1  ;;  %v829_v44 = vstv %s854_s9 }
 0x168   :  { %v485_v51 = vadd.f32 %v481_v42, %v267_v41  ;;  %v483_v52 = vmul.f32 %v479_v33, %v476_v49 }
 0x169   :  { %v502_v54 = vadd.f32 %v495_v39, %v484_v46  ;;  %v486_v55 = vadd.f32 %v482_v48, %v268_v45 }
 0x16a   :  { %v503_v56 = vadd.f32 %v499_v43, %v485_v51  ;;  %v487_v57 = vadd.f32 %v483_v52, %v269_v50 }
 0x16b   :  { %v518_v58 = vadd.f32 %v511_v47, %v502_v54  ;;  %v504_v59 = vadd.f32 %v495_v39, %v486_v55 }
 0x16c   :  { %v505_v60 = vadd.f32 %v499_v43, %v487_v57  ;;  %v519_v61 = vadd.f32 %v515_v53, %v503_v56 }
 0x16d   :  { %v520_v62 = vadd.f32 %v511_v47, %v504_v59  ;;  %v526_v63 = vmul.f32 0.2, %v518_v58  ;;  %vm522_vm1 = vcmp.ge.f32.partialorder %v518_v58, 0.0 }
 0x16e   :  { %v521_v0 = vadd.f32 %v515_v53, %v505_v60  ;;  %v527_v1 = vmul.f32 0.2, %v519_v61  ;;  %vm523_vm2 = vcmp.ge.f32.partialorder %v519_v61, 0.0 }
 0x16f   :  { %vm524_vm3 = vcmp.ge.f32.partialorder %v520_v62, 0.0  ;;  %v528_v2 = vmul.f32 0.2, %v520_v62  ;;  %v530_v4 = vsel %vm522_vm1, %v518_v58, %v526_v63 }
 0x170   :  { %vm525_vm4 = vcmp.ge.f32.partialorder %v521_v0, 0.0  ;;  %v529_v3 = vmul.f32 0.2, %v521_v0  ;;  %v531_v6 = vsel %vm523_vm2, %v519_v61, %v527_v1 }
 0x171   :  { %v532_v5 = vsel %vm524_vm3, %v520_v62, %v528_v2 }
 0x172   :  { %v533_v7 = vsel %vm525_vm4, %v521_v0, %v529_v3  ;;  %v534_v8 = vpack.c.bf16 %v532_v5, %v530_v4 }
 0x173   :  { %v535_v9 = vpack.c.bf16 %v533_v7, %v531_v6 }
 0x175   :  { %760 = vmatprep.mubr.bf16.mxu0 %v535_v9 }
 0x176   :  { %761 = vmatmul.mubr.bf16.vlgmr.msra.gmra.mrb[0].mxu0 %v534_v8 }
 0x249   :  { %v762_v13 = vpop.f32.mrb[0].mxu0 }
 0x24a   :  { %v772_v15 = vmul.f32 %v771_v11, %v762_v13  ;;  %v764_v16 = vpop.f32.mrb[1].mxu0 }
 0x24b   :  { %v773_v18 = vmul.f32 %v771_v11, %v764_v16  ;;  %v766_v19 = vpop.f32.mrb[2].mxu0 }
 0x24c   :  { %v788_v20 = vadd.f32 %v781_v12, %v772_v15  ;;  %v774_v21 = vmul.f32 %v771_v11, %v766_v19  ;;  %v768_v22 = vpop.f32.mrb[3].mxu0 }
 0x24d   :  { %v789_v23 = vadd.f32 %v785_v14, %v773_v18  ;;  %v775_v24 = vmul.f32 %v771_v11, %v768_v22 }
 0x24e   :  { %v796_v26 = vmul.f32 0.2, %v788_v20  ;;  %v790_v27 = vadd.f32 %v781_v12, %v774_v21  ;;  %vm792_vm5 = vcmp.ge.f32.partialorder %v788_v20, 0.0 }
 0x24f   :  { %v797_v29 = vmul.f32 0.2, %v789_v23  ;;  %v791_v30 = vadd.f32 %v785_v14, %v775_v24  ;;  %vm793_vm6 = vcmp.ge.f32.partialorder %v789_v23, 0.0 }
 0x250   :  { %v798_v32 = vmul.f32 0.2, %v790_v27  ;;  %v800_v33 = vsel %vm792_vm5, %v788_v20, %v796_v26  ;;  %vm794_vm7 = vcmp.ge.f32.partialorder %v790_v27, 0.0 }
 0x251   :  { %v799_v35 = vmul.f32 0.2, %v791_v30  ;;  %v801_v36 = vsel %vm793_vm6, %v789_v23, %v797_v29  ;;  %v816_v37 = vmul.f32 %v809_v25, %v800_v33  ;;  %vm795_vm8 = vcmp.ge.f32.partialorder %v791_v30, 0.0 }
 0x252   :  { %v817_v38 = vmul.f32 %v813_v28, %v801_v36  ;;  %v802_v39 = vsel %vm794_vm7, %v790_v27, %v798_v32 }
 0x253   :  { %v803_v40 = vsel %vm795_vm8, %v791_v30, %v799_v35  ;;  %v818_v41 = vmul.f32 %v809_v25, %v802_v39 }
 0x254   :  { %v820_v31 = vadd.f32 %v817_v38, %v816_v37  ;;  %v819_v42 = vmul.f32 %v813_v28, %v803_v40 }
 0x256   :  { %821 = vadd.xlane.f32.xlu0 %v820_v31  ;;  %v823_v43 = vadd.f32 %v819_v42, %v818_v41 }
 0x25a   :  { %824 = vadd.xlane.f32.xlu0 %v823_v43 }
 0x2e3   :  { %v822_v45 = vpop.xlane.xlu0 %821 }
 0x2e4   :  { %v827_v46 = vmul.f32 %v826_v34, %v822_v45 }
 0x2e6   :  { %v830_v47 = vadd.f32 %v829_v44, %v827_v46 }
 0x2e7   :  { %v825_v48 = vpop.xlane.xlu0 %824 }
 0x2e8   :  { %v832_v49 = vsub.f32 0.0, %v830_v47  ;;  %v828_v50 = vmul.f32 %v826_v34, %v825_v48 }
 0x2ea   :  { %v834_v51 = vmul.f32 1.442695, %v832_v49  ;;  %v831_v52 = vadd.f32 %v829_v44, %v828_v50 }
 0x2ec   :  { %1054 = vpow2.f32 %v834_v51  ;;  %v833_v53 = vsub.f32 0.0, %v831_v52 }
 0x2ee   :  { %v836_v54 = vmul.f32 1.442695, %v833_v53 }
 0x2f0   :  { %1056 = vpow2.f32 %v836_v54 }
 0x2f6   :  { %v1055_v55 = vpop.eup %1054 }
 0x2f7   :  { %v838_v56 = vadd.f32 1.0, %v1055_v55 }
 0x2f9   :  { %1058 = vrcp.f32 %v838_v56 }
 0x2fa   :  { %v1057_v57 = vpop.eup %1056 }
 0x2fb   :  { %v839_v58 = vadd.f32 1.0, %v1057_v57 }
 0x2fd   :  { %1060 = vrcp.f32 %v839_v58 }
 0x303   :  { %v1059_v59 = vpop.eup %1058 }
 0x304   :  { %843 = vst.msk [vmem:[%s1415_s10] sm:$0xff] %vm842_vm9, %v1059_v59 }
 0x307   :  { %v1061_v60 = vpop.eup %1060 }
 0x308   :  { %844 = vst.msk [vmem:[%s1415_s10 + $0x8] sm:$0xff] %vm842_vm9, %v1061_v60 }
 0x309   :  { %849 = vsyncpa [#allocation3], 1 }

</bundles_post_ra>
